<compile_context>
chip_gen: v5e
topology: v5e:2x2
jax: 0.10.0
libtpu: 0.0.40
codegen_flags: <defaults>
</compile_context>

<pallas_src>
import jax
import jax.numpy as jnp
from jax.experimental import pallas as pl
from jax.experimental.pallas import tpu as pltpu

# ---- "opt" configuration (compile-time constants) ---------------------------
DIM_E = 1
N_COMPONENT = 20
SIGMA_MIN = 1e-3
D_TOTAL = DIM_E + 6 * N_COMPONENT  # 121
D_PAD = 128                        # lane-dense width for the fused matmul


def _round_up(x, m):
    return ((x + m - 1) // m) * m


def _pick_tb(batch, block_b):
    """Tile rows: >=2 grid steps for batch>8 (v7x has 2 TCs), capped at block_b."""
    if batch <= 8:
        return 8
    half = _round_up((batch + 1) // 2, 8)
    return max(8, min(block_b, half))


# ---- shared in-kernel math ---------------------------------------------------
def _fast_recip(x):
    """approx vrcp (single EUP push) + one Newton-Raphson step (VPU has slack)."""
    r = pl.reciprocal(x, approx=True)
    return r * (2.0 - x * r)


def _yhat_from_logits(hat):
    """hat: (TB, W) float32 logits (W >= D_TOTAL; W == D_TOTAL or D_PAD).
    Returns (TB, W) float32; lanes >= D_TOTAL are zero.

    Single-exp formulation:
      e lane    : sigmoid(-hat) = 1 / (1 + exp(hat))
      pi lanes  : exp(hat - max) / sum(exp(hat - max))
      mu lanes  : identity
      rho lanes : tanh(hat) = 1 - 2 / (1 + exp(2*hat))
      sigma lane: exp(hat) + sigma_min
    so one exp of a per-lane-selected argument serves every branch."""
    e, K = DIM_E, N_COMPONENT
    lane = jax.lax.broadcasted_iota(jnp.int32, hat.shape, 1)
    pi_mask = (lane >= e) & (lane < e + K)
    rho_mask = (lane >= e + 3 * K) & (lane < e + 4 * K)

    # Masked row max for a numerically stable softmax over the pi lanes.
    pi_max = jnp.max(jnp.where(pi_mask, hat, -jnp.inf), axis=1, keepdims=True)

    # Single EUP exp pass over the whole tile.
    arg = jnp.where(pi_mask, hat - pi_max, jnp.where(rho_mask, 2.0 * hat, hat))
    ex = jnp.exp(arg)

    # Softmax denominator: only pi lanes contribute; denom in [1, K].
    denom = jnp.sum(jnp.where(pi_mask, ex, 0.0), axis=1, keepdims=True)
    pi_t = ex * _fast_recip(denom)

    # Shared reciprocal for sigmoid / tanh; clamp keeps 1+ex finite so the
    # Newton step never sees inf (huge logits then give the correct limits).
    r1pe = _fast_recip(1.0 + jnp.minimum(ex, jnp.float32(1e30)))
    sig_neg = r1pe                   # sigmoid(-hat)       (e lane, ex = exp(hat))
    tanh_v = 1.0 - 2.0 * r1pe        # tanh(hat)           (rho lanes, ex = exp(2*hat))
    sigma_v = ex + SIGMA_MIN         # exp(hat) + sigma_min (sigma lanes)

    return jnp.where(lane < e, sig_neg,
           jnp.where(lane < e + K, pi_t,
           jnp.where(lane < e + 3 * K, hat,
           jnp.where(lane < e + 4 * K, tanh_v,
           jnp.where(lane < D_TOTAL, sigma_v, 0.0)))))


# ---- kernels -----------------------------------------------------------------
def yhat_kernel(h_ref, y_ref):
    """Standalone YHat head: hat_h tile (TB, 121) -> y tile (TB, 121)."""
    hat = h_ref[...].astype(jnp.float32)
    y = _yhat_from_logits(hat)
    y_ref[...] = y[:, : y_ref.shape[1]].astype(y_ref.dtype)


def fused_y_head_kernel(h_ref, w_ref, b_ref, y_ref):
    """Fused y_linear + YHat: (TB,H) @ (H,128) on the MXU (native dtype
    operands, f32 accumulate), then the single-exp activation select and one
    store of y at its final width."""
    hat = jnp.dot(h_ref[...], w_ref[...], preferred_element_type=jnp.float32)
    hat = hat + b_ref[...].astype(jnp.float32)
    y = _yhat_from_logits(hat)
    y_ref[...] = y[:, : y_ref.shape[1]].astype(y_ref.dtype)


# ---- wrappers ----------------------------------------------------------------
def yhat_forward(hat_h, *, block_b=1024):
    """hat_h: (B, 121) -> y: (B, 121). Standalone YHat head (no pad/slice passes)."""
    B, D = hat_h.shape
    assert D == D_TOTAL, f"expected feature dim {D_TOTAL}, got {D}"

    tb = _pick_tb(B, block_b)
    b_pad = _round_up(B, tb)
    h_p = hat_h if b_pad == B else jnp.pad(hat_h, ((0, b_pad - B), (0, 0)))

    y_p = pl.pallas_call(
        yhat_kernel,
        out_shape=jax.ShapeDtypeStruct((b_pad, D_TOTAL), hat_h.dtype),
        grid=(b_pad // tb,),
        in_specs=[pl.BlockSpec((tb, D_TOTAL), lambda i: (i, 0))],
        out_specs=pl.BlockSpec((tb, D_TOTAL), lambda i: (i, 0)),
        compiler_params=pltpu.CompilerParams(
            dimension_semantics=("parallel",)),
        cost_estimate=pl.CostEstimate(
            flops=10 * b_pad * D_TOTAL,
            transcendentals=2 * b_pad * D_TOTAL,
            bytes_accessed=2 * 4 * b_pad * D_TOTAL),
    )(h_p)
    return y_p if b_pad == B else y_p[:B]


def fused_y_head_forward(h, w, b, *, block_b=1024, padded_output=False):
    """Fused PRNNCore GMM head: y = YHat(h @ w + b).

    h: (B, H) hidden state (concat of LSTM layer outputs),
    w: (H, 121) y_linear weight (already transposed to (in, out)),
    b: (121,)   y_linear bias.
    Returns y: (B, 121), or (B, 128) zero-padded if padded_output=True
    (lane-dense stores; preferred when the consumer can handle the pad)."""
    B, H = h.shape
    assert w.shape == (H, D_TOTAL) and b.shape == (D_TOTAL,)

    tb = _pick_tb(B, block_b)
    b_pad = _round_up(B, tb)

    h_p = h if b_pad == B else jnp.pad(h, ((0, b_pad - B), (0, 0)))
    # Tiny one-time pads of the (resident) weight/bias so the MXU sees N=128.
    w_p = jnp.pad(w, ((0, 0), (0, D_PAD - D_TOTAL)))                    # (H, 128)
    bias_p = jnp.pad(b, (0, D_PAD - D_TOTAL)).reshape(1, D_PAD).astype(jnp.float32)

    out_w = D_PAD if padded_output else D_TOTAL
    y_p = pl.pallas_call(
        fused_y_head_kernel,
        out_shape=jax.ShapeDtypeStruct((b_pad, out_w), h.dtype),
        grid=(b_pad // tb,),
        in_specs=[
            pl.BlockSpec((tb, H), lambda i: (i, 0)),       # hidden tile
            pl.BlockSpec((H, D_PAD), lambda i: (0, 0)),    # weight (resident)
            pl.BlockSpec((1, D_PAD), lambda i: (0, 0)),    # bias (resident)
        ],
        out_specs=pl.BlockSpec((tb, out_w), lambda i: (i, 0)),
        compiler_params=pltpu.CompilerParams(
            dimension_semantics=("parallel",)),
        cost_estimate=pl.CostEstimate(
            flops=2 * b_pad * H * D_PAD,
            transcendentals=2 * b_pad * D_PAD,
            bytes_accessed=4 * (b_pad * H + H * D_PAD + b_pad * out_w)),
    )(h_p, w_p, bias_p)
    return y_p if b_pad == B else y_p[:B]


# ---- pure-JAX references -----------------------------------------------------
def yhat_reference(hat_h):
    e, K = DIM_E, N_COMPONENT
    h = hat_h.astype(jnp.float32)
    e_t = jax.nn.sigmoid(-h[:, 0:e])
    pi_t = jax.nn.softmax(h[:, e:e + K], axis=1)
    mu_1_t = h[:, e + K:e + 2 * K]
    mu_2_t = h[:, e + 2 * K:e + 3 * K]
    rho_t = jnp.tanh(h[:, e + 3 * K:e + 4 * K])
    sigma_1_t = jnp.exp(h[:, e + 4 * K:e + 5 * K]) + SIGMA_MIN
    sigma_2_t = jnp.exp(h[:, e + 5 * K:e + 6 * K]) + SIGMA_MIN
    return jnp.concatenate(
        [e_t, pi_t, mu_1_t, mu_2_t, rho_t, sigma_1_t, sigma_2_t], axis=1
    ).astype(hat_h.dtype)


def fused_reference(h, w, b):
    hat_h = (h.astype(jnp.float32) @ w.astype(jnp.float32)
             + b.astype(jnp.float32))
    return yhat_reference(hat_h).astype(h.dtype)


# ---- self-test ---------------------------------------------------------------
if __name__ == "__main__":
    key = jax.random.PRNGKey(0)
    k1, k2, k3 = jax.random.split(key, 3)

    # Small shapes consistent with PRNNCore: hid_size=32, hid_layer=2 -> H=64.
    B, H = 8, 64
    stdv = 1.0 / jnp.sqrt(jnp.float32(H))   # nn.Linear-style init scale
    h = jax.random.normal(k1, (B, H), dtype=jnp.float32)
    w = jax.random.uniform(k2, (H, D_TOTAL), dtype=jnp.float32,
                           minval=-stdv, maxval=stdv)
    b = jax.random.uniform(k3, (D_TOTAL,), dtype=jnp.float32,
                           minval=-stdv, maxval=stdv)

    # 1) Fused y_linear + YHat kernel (main path of PRNNCore.forward).
    y_fused = jax.block_until_ready(fused_y_head_forward(h, w, b))
    y_fused_ref = fused_reference(h, w, b)
    assert y_fused.shape == (B, D_TOTAL)
    assert jnp.allclose(y_fused, y_fused_ref, atol=1e-4, rtol=1e-4), \
        "fused kernel mismatch vs reference"

    # 1b) Lane-dense padded-output variant (consumer-tolerant fast path).
    y_fused_pad = jax.block_until_ready(
        fused_y_head_forward(h, w, b, padded_output=True))
    assert y_fused_pad.shape == (B, D_PAD)
    assert jnp.allclose(y_fused_pad[:, :D_TOTAL], y_fused_ref,
                        atol=1e-4, rtol=1e-4), "padded fused mismatch"
    assert jnp.all(y_fused_pad[:, D_TOTAL:] == 0.0), "pad lanes not zero"

    # 2) Standalone YHat kernel on a precomputed hat_h.
    hat_h = h @ w + b
    y = jax.block_until_ready(yhat_forward(hat_h))
    y_ref = yhat_reference(hat_h)
    assert y.shape == (B, D_TOTAL)
    assert jnp.allclose(y, y_ref, atol=1e-5, rtol=1e-4), \
        "yhat kernel mismatch vs reference"

    print("KERNEL_OK")
</pallas_src>

<mosaic_0001>
module attributes {stable_mosaic.version = 11 : i64} {
  func.func @fused_y_head_kernel(%arg0: i32, %arg1: memref<8x64xf32, #tpu.memory_space<vmem>>, %arg2: memref<64x128xf32, #tpu.memory_space<vmem>>, %arg3: memref<1x128xf32, #tpu.memory_space<vmem>>, %arg4: memref<8x121xf32, #tpu.memory_space<vmem>>) attributes {dimension_semantics = [#tpu.dimension_semantics<parallel>], iteration_bounds = array<i64: 1>, scalar_prefetch = 0 : i64, scratch_operands = 0 : i64, tpu.core_type = #tpu.core_type<tc>, window_params = [{transform_indices = @transform_0, window_bounds = array<i64: 8, 64>}, {pipeline_mode = #tpu.pipeline_mode<synchronous>, transform_indices = @transform_1, window_bounds = array<i64: 64, 128>}, {pipeline_mode = #tpu.pipeline_mode<synchronous>, transform_indices = @transform_2, window_bounds = array<i64: 1, 128>}, {transform_indices = @transform_3, window_bounds = array<i64: 8, 121>}]} {
    %c0 = arith.constant 0 : index
    %c0_0 = arith.constant 0 : index
    %0 = vector.load %arg1[%c0, %c0_0] : memref<8x64xf32, #tpu.memory_space<vmem>>, vector<8x64xf32>
    %c0_1 = arith.constant 0 : index
    %c0_2 = arith.constant 0 : index
    %1 = vector.load %arg2[%c0_1, %c0_2] : memref<64x128xf32, #tpu.memory_space<vmem>>, vector<64x128xf32>
    %cst = arith.constant dense<0.000000e+00> : vector<8x128xf32>
    %2 = tpu.matmul %0, %1, %cst {dimension_numbers = #tpu.dot_dimension_numbers<[1], [0], [0], [1], [0, 0, 1, 1], [], []>} : vector<8x64xf32>, vector<64x128xf32>, vector<8x128xf32> -> vector<8x128xf32>
    %c0_3 = arith.constant 0 : index
    %c0_4 = arith.constant 0 : index
    %3 = vector.load %arg3[%c0_3, %c0_4] : memref<1x128xf32, #tpu.memory_space<vmem>>, vector<1x128xf32>
    %4 = vector.broadcast %3 : vector<1x128xf32> to vector<8x128xf32>
    %5 = arith.addf %2, %4 : vector<8x128xf32>
    %6 = tpu.iota {dimensions = array<i32: 1>} : vector<8x128xi32>
    %c1_i32 = arith.constant 1 : i32
    %7 = vector.broadcast %c1_i32 : i32 to vector<8x128xi32>
    %8 = arith.cmpi sge, %6, %7 : vector<8x128xi32>
    %c21_i32 = arith.constant 21 : i32
    %9 = vector.broadcast %c21_i32 : i32 to vector<8x128xi32>
    %10 = arith.cmpi slt, %6, %9 : vector<8x128xi32>
    %11 = arith.andi %8, %10 : vector<8x128xi1>
    %c61_i32 = arith.constant 61 : i32
    %12 = vector.broadcast %c61_i32 : i32 to vector<8x128xi32>
    %13 = arith.cmpi sge, %6, %12 : vector<8x128xi32>
    %c81_i32 = arith.constant 81 : i32
    %14 = vector.broadcast %c81_i32 : i32 to vector<8x128xi32>
    %15 = arith.cmpi slt, %6, %14 : vector<8x128xi32>
    %16 = arith.andi %13, %15 : vector<8x128xi1>
    %cst_5 = arith.constant 0xFF800000 : f32
    %17 = vector.broadcast %cst_5 : f32 to vector<8x128xf32>
    %18 = arith.select %11, %5, %17 : vector<8x128xi1>, vector<8x128xf32>
    %cst_6 = arith.constant dense<0xFF800000> : vector<8xf32>
    %19 = vector.multi_reduction <maximumf>, %18, %cst_6 [1] : vector<8x128xf32> to vector<8xf32>
    %20 = vector.shape_cast %19 : vector<8xf32> to vector<8x1xf32>
    %21 = vector.broadcast %20 : vector<8x1xf32> to vector<8x128xf32>
    %22 = arith.subf %5, %21 : vector<8x128xf32>
    %cst_7 = arith.constant 2.000000e+00 : f32
    %23 = vector.broadcast %cst_7 : f32 to vector<8x128xf32>
    %24 = arith.mulf %23, %5 : vector<8x128xf32>
    %25 = arith.select %16, %24, %5 : vector<8x128xi1>, vector<8x128xf32>
    %26 = arith.select %11, %22, %25 : vector<8x128xi1>, vector<8x128xf32>
    %27 = math.exp %26 : vector<8x128xf32>
    %cst_8 = arith.constant 0.000000e+00 : f32
    %28 = vector.broadcast %cst_8 : f32 to vector<8x128xf32>
    %29 = arith.select %11, %27, %28 : vector<8x128xi1>, vector<8x128xf32>
    %cst_9 = arith.constant dense<0.000000e+00> : vector<8xf32>
    %30 = vector.multi_reduction <add>, %29, %cst_9 [1] : vector<8x128xf32> to vector<8xf32>
    %31 = vector.shape_cast %30 : vector<8xf32> to vector<8x1xf32>
    %32 = tpu.reciprocal %31 {approx = true} : vector<8x1xf32> -> vector<8x1xf32>
    %33 = arith.mulf %31, %32 : vector<8x1xf32>
    %cst_10 = arith.constant 2.000000e+00 : f32
    %34 = vector.broadcast %cst_10 : f32 to vector<8x1xf32>
    %35 = arith.subf %34, %33 : vector<8x1xf32>
    %36 = arith.mulf %32, %35 : vector<8x1xf32>
    %37 = vector.broadcast %36 : vector<8x1xf32> to vector<8x128xf32>
    %38 = arith.mulf %27, %37 : vector<8x128xf32>
    %cst_11 = arith.constant 1.000000e+30 : f32
    %39 = vector.broadcast %cst_11 : f32 to vector<8x128xf32>
    %40 = arith.minimumf %27, %39 : vector<8x128xf32>
    %cst_12 = arith.constant 1.000000e+00 : f32
    %41 = vector.broadcast %cst_12 : f32 to vector<8x128xf32>
    %42 = arith.addf %41, %40 : vector<8x128xf32>
    %43 = tpu.reciprocal %42 {approx = true} : vector<8x128xf32> -> vector<8x128xf32>
    %44 = arith.mulf %42, %43 : vector<8x128xf32>
    %cst_13 = arith.constant 2.000000e+00 : f32
    %45 = vector.broadcast %cst_13 : f32 to vector<8x128xf32>
    %46 = arith.subf %45, %44 : vector<8x128xf32>
    %47 = arith.mulf %43, %46 : vector<8x128xf32>
    %cst_14 = arith.constant 2.000000e+00 : f32
    %48 = vector.broadcast %cst_14 : f32 to vector<8x128xf32>
    %49 = arith.mulf %48, %47 : vector<8x128xf32>
    %cst_15 = arith.constant 1.000000e+00 : f32
    %50 = vector.broadcast %cst_15 : f32 to vector<8x128xf32>
    %51 = arith.subf %50, %49 : vector<8x128xf32>
    %cst_16 = arith.constant 1.000000e-03 : f32
    %52 = vector.broadcast %cst_16 : f32 to vector<8x128xf32>
    %53 = arith.addf %27, %52 : vector<8x128xf32>
    %c1_i32_17 = arith.constant 1 : i32
    %54 = vector.broadcast %c1_i32_17 : i32 to vector<8x128xi32>
    %55 = arith.cmpi slt, %6, %54 : vector<8x128xi32>
    %c21_i32_18 = arith.constant 21 : i32
    %56 = vector.broadcast %c21_i32_18 : i32 to vector<8x128xi32>
    %57 = arith.cmpi slt, %6, %56 : vector<8x128xi32>
    %c61_i32_19 = arith.constant 61 : i32
    %58 = vector.broadcast %c61_i32_19 : i32 to vector<8x128xi32>
    %59 = arith.cmpi slt, %6, %58 : vector<8x128xi32>
    %c81_i32_20 = arith.constant 81 : i32
    %60 = vector.broadcast %c81_i32_20 : i32 to vector<8x128xi32>
    %61 = arith.cmpi slt, %6, %60 : vector<8x128xi32>
    %c121_i32 = arith.constant 121 : i32
    %62 = vector.broadcast %c121_i32 : i32 to vector<8x128xi32>
    %63 = arith.cmpi slt, %6, %62 : vector<8x128xi32>
    %cst_21 = arith.constant 0.000000e+00 : f32
    %64 = vector.broadcast %cst_21 : f32 to vector<8x128xf32>
    %65 = arith.select %63, %53, %64 : vector<8x128xi1>, vector<8x128xf32>
    %66 = arith.select %61, %51, %65 : vector<8x128xi1>, vector<8x128xf32>
    %67 = arith.select %59, %5, %66 : vector<8x128xi1>, vector<8x128xf32>
    %68 = arith.select %57, %38, %67 : vector<8x128xi1>, vector<8x128xf32>
    %69 = arith.select %55, %47, %68 : vector<8x128xi1>, vector<8x128xf32>
    %70 = vector.extract_strided_slice %69 {offsets = [0, 0], sizes = [8, 121], strides = [1, 1]} : vector<8x128xf32> to vector<8x121xf32>
    %c0_22 = arith.constant 0 : index
    %c0_23 = arith.constant 0 : index
    %71 = vector.load %arg4[%c0_22, %c0_23] : memref<8x121xf32, #tpu.memory_space<vmem>>, vector<8x121xf32>
    tpu.vector_store %arg4[%c0_22, %c0_23], %70 {strides = array<i32>} : memref<8x121xf32, #tpu.memory_space<vmem>>, vector<8x121xf32>,
    return
  }
  func.func @transform_0(%arg0: i32) -> (i32, i32) {
    %c0_i32 = arith.constant 0 : i32
    %c0_i32_0 = arith.constant 0 : i32
    return %arg0, %c0_i32 : i32, i32
  }
  func.func @transform_1(%arg0: i32) -> (i32, i32) {
    %c0_i32 = arith.constant 0 : i32
    %c0_i32_0 = arith.constant 0 : i32
    %c0_i32_1 = arith.constant 0 : i32
    return %c0_i32, %c0_i32_0 : i32, i32
  }
  func.func @transform_2(%arg0: i32) -> (i32, i32) {
    %c0_i32 = arith.constant 0 : i32
    %c0_i32_0 = arith.constant 0 : i32
    %c0_i32_1 = arith.constant 0 : i32
    return %c0_i32, %c0_i32_0 : i32, i32
  }
  func.func @transform_3(%arg0: i32) -> (i32, i32) {
    %c0_i32 = arith.constant 0 : i32
    %c0_i32_0 = arith.constant 0 : i32
    return %arg0, %c0_i32 : i32, i32
  }
}

</mosaic_0001>

<bundles_post_ra>
// kernel: tpu_custom_call.1
= control target key start
LH: loop header
LB: loop body
LE: loop exit
PB: predicated region body
PF: predicated region fallthrough
CT: control target
= control target key end

     0   :  { %8 = vsyncpa [#allocation3], 0  ;;  %s286_s0 = inlined_call_operand.hbm [shape: f32[8,64], index: 0, kind: input, shape index: {}]   ;;  %s287_s1 = inlined_call_operand.hbm [shape: f32[64,128], index: 1, kind: input, shape index: {}]   ;;  %s288_s2 = inlined_call_operand.vmem [shape: f32[1,128], index: 2, kind: input, shape index: {}]   ;;  %s289_s3 = inlined_call_operand.hbm [shape: f32[8,121], index: 3, kind: output, shape index: {}]  }
   0x1   :  { %9 = vsyncpa [#allocation6], 0 }
   0x2   :  { %10 = vsyncpa [#allocation4], 0  ;;  %s16_s14 = sshll.u32 %s286_s0, 4  ;;  %s235_s15 = smov [#allocation2]   ;;  %s17_s14 = int_to_ptr.hbm [resolvable:$true] %s16_s14 }
   0x3   :  { %s18_s16 = sshll.u32 %s235_s15, 4  ;;  %s26_s19 = sshll.u32 %s287_s1, 4  ;;  %s19_s16 = int_to_ptr.vmem [resolvable:$true] %s18_s16  ;;  %s27_s19 = int_to_ptr.hbm [resolvable:$true] %s26_s19 }
   0x4   :  { %21 = dma.hbm_to_vmem [thread:$0]  %s17_s14, 128, %s19_s16, [#allocation3]  }
   0x5   :  { %s236_s20 = smov [#allocation5]   ;;  %s237_s22 = smov 128  }
   0x6   :  { %s28_s21 = sshll.u32 %s236_s20, 4  ;;  %s238_s23 = smov 8   ;;  %s29_s21 = int_to_ptr.vmem [resolvable:$true] %s28_s21 }
   0x7   :  { %34 = dma.hbm_to_vmem [thread:$0]  %s27_s19, 1024, %s29_s21, [#allocation6], %s237_s22, %s237_s22, %s238_s23  }
   0x8   :  { %229 = dma.done.wait [#allocation3], 128  }
   0x9   :  { %230 = vsyncadd [#allocation3], 4294967168 }
   0xa   :  { %231 = dma.done.wait [#allocation6], 1024  }
   0xb   :  { %232 = vsyncadd [#allocation6], 4294966272  ;;  %v53_v0 = vld [vmem:[#allocation5 + $0x38] sm:$0xff]  ;;  %v52_v1 = vld [vmem:[#allocation5 + $0x30] sm:$0xff]  ;;  %vm58_vm0 = vcmask 523264   ;;  %v82_v9 = vlaneseq  ;;  %s133_s27 = sshll.u32 %s289_s3, 4  ;;  %s134_s27 = int_to_ptr.hbm [resolvable:$true] %s133_s27 }
   0xc   :  { %70 = vmatpush.msra.mxu0 %v53_v0  ;;  %v51_v2 = vld [vmem:[#allocation5 + $0x28] sm:$0xff]  ;;  %v50_v3 = vld [vmem:[#allocation5 + $0x20] sm:$0xff]  ;;  %v49_v4 = vld [vmem:[#allocation5 + $0x18] sm:$0xff]  ;;  %vm124_vm10 = vcmask 990208  }
   0xd   :  { %v48_v5 = vld [vmem:[#allocation5 + $0x10] sm:$0xff]  ;;  %v47_v6 = vld [vmem:[#allocation5 + $0x8] sm:$0xff]  ;;  %v46_v7 = vld [vmem:[#allocation5] sm:$0xff]  ;;  %v83_v10 = vand.u32 127, %v82_v9 }
   0xe   :  { %71 = vmatpush.msra.mxu0 %v52_v1  ;;  %v45_v8 = vld [vmem:[#allocation2] sm:$0xff] }
   0xf   :  { %v150_v11 = vld [vmem:[%s288_s2] ss:$0 sm:$0xff]  ;;  %vm84_vm1 = vcmp.ge.s32.totalorder %v83_v10, 1  ;;  %vm85_vm2 = vcmp.lt.s32.totalorder %v83_v10, 21  ;;  %vm87_vm4 = vcmp.ge.s32.totalorder %v83_v10, 61  ;;  %vm88_vm5 = vcmp.lt.s32.totalorder %v83_v10, 81 }
  0x10   :  { %72 = vmatpush.msra.mxu0 %v51_v2  ;;  %vm270_vm3 = vmand %vm84_vm1, %vm85_vm2  ;;  %vm118_vm7 = vcmp.lt.s32.totalorder %v83_v10, 121  ;;  %vm117_vm8 = vcmp.lt.s32.totalorder %v83_v10, 61  ;;  %s239_s2 = smov [#allocation7]   ;;  %vm116_vm9 = vcmp.lt.s32.totalorder %v83_v10, 1 }
  0x11   :  { %vm89_vm6 = vmand %vm87_vm4, %vm88_vm5  ;;  %s131_s24 = sshll.u32 %s239_s2, 4  ;;  %s132_s24 = int_to_ptr.vmem [resolvable:$true] %s131_s24 }
  0x12   :  { %73 = vmatpush.msra.mxu0 %v50_v3 }
  0x14   :  { %74 = vmatpush.msra.mxu0 %v49_v4 }
  0x16   :  { %75 = vmatpush.msra.mxu0 %v48_v5 }
  0x18   :  { %76 = vmatpush.msra.mxu0 %v47_v6 }
  0x1a   :  { %77 = vmatpush.msra.mxu0 %v46_v7 }
  0x1b   :  { %144 = vmatmul.msk.f32.vlgmr.msra.gmra.mxu0 %vm58_vm0, %v45_v8 }
  0x98   :  { %v79_v12 = vpop.f32.mrf.mxu0 }
  0x99   :  { %v80_v14 = vadd.f32 %v150_v11, %v79_v12 }
  0x9b   :  { %v90_v15 = vsel %vm270_vm3, %v80_v14, -inf  ;;  %v94_v16 = vmul.f32 2.0, %v80_v14 }
  0x9c   :  { %91 = vmax.xlane.f32.xlu0 %v90_v15 }
  0x9d   :  { %v95_v19 = vsel %vm89_vm6, %v94_v16, %v80_v14 }
 0x10f   :  { %v92_v17 = vpop.xlane.xlu0 %91 }
 0x110   :  { %v93_v18 = vsub.f32 %v80_v14, %v92_v17 }
 0x112   :  { %v96_v20 = vsel %vm270_vm3, %v93_v18, %v95_v19 }
 0x113   :  { %v97_v21 = vmul.f32 1.442695, %v96_v20 }
 0x115   :  { %151 = vpow2.f32 %v97_v21 }
 0x11b   :  { %v152_v22 = vpop.eup %151 }
 0x11c   :  { %v99_v23 = vsel %vm270_vm3, %v152_v22, 0.0  ;;  %v107_v24 = vmin.f32 %v152_v22, 1e+30  ;;  %v115_v33 = vadd.f32 0.001, %v152_v22 }
 0x11d   :  { %100 = vadd.xlane.f32.xlu0 %v99_v23 }
 0x11e   :  { %v108_v25 = vadd.f32 1.0, %v107_v24  ;;  %v119_v37 = vsel %vm118_vm7, %v115_v33, 0.0 }
 0x120   :  { %153 = vrcp.f32 %v108_v25 }
 0x126   :  { %v154_v26 = vpop.eup %153 }
 0x127   :  { %v110_v27 = vmul.f32 %v154_v26, %v108_v25 }
 0x129   :  { %v111_v28 = vsub.f32 2.0, %v110_v27 }
 0x12b   :  { %v112_v30 = vmul.f32 %v154_v26, %v111_v28 }
 0x12d   :  { %v113_v31 = vmul.f32 2.0, %v112_v30 }
 0x12f   :  { %v114_v35 = vsub.f32 1.0, %v113_v31 }
 0x131   :  { %v120_v39 = vsel %vm88_vm5, %v114_v35, %v119_v37 }
 0x132   :  { %v121_v41 = vsel %vm117_vm8, %v80_v14, %v120_v39 }
 0x190   :  { %v101_v29 = vpop.xlane.xlu0 %100 }
 0x191   :  { %155 = vrcp.f32 %v101_v29 }
 0x197   :  { %v156_v32 = vpop.eup %155 }
 0x198   :  { %v103_v34 = vmul.f32 %v156_v32, %v101_v29 }
 0x19a   :  { %v104_v36 = vsub.f32 2.0, %v103_v34 }
 0x19c   :  { %v105_v38 = vmul.f32 %v156_v32, %v104_v36 }
 0x19e   :  { %v106_v40 = vmul.f32 %v152_v22, %v105_v38 }
 0x1a0   :  { %v122_v42 = vsel %vm85_vm2, %v106_v40, %v121_v41 }
 0x1a1   :  { %v123_v43 = vsel %vm116_vm9, %v112_v30, %v122_v42 }
 0x1a2   :  { %125 = vst.msk [vmem:[#allocation7] sm:$0xff] %vm124_vm10, %v123_v43 }
 0x1a3   :  { %136 = dma.vmem_to_hbm [thread:$0]  %s132_s24, 128, %s134_s27, [#allocation4]  }
 0x1a4   :  { %233 = dma.done.wait [#allocation4], 128  }
 0x1a5   :  { %234 = vsyncadd [#allocation4], 4294967168 }
 0x1a6   :  { %141 = vsyncpa [#allocation3], 1 }
 0x1a7   :  { %142 = vsyncpa [#allocation6], 1 }
 0x1a8   :  { %143 = vsyncpa [#allocation4], 1 }

</bundles_post_ra>
